<compile_context>
chip_gen: v5e
topology: v5e:2x2
jax: 0.10.0
libtpu: 0.0.40
codegen_flags: <defaults>
</compile_context>

<pallas_src>
from functools import partial

import jax
import jax.numpy as jnp
from jax.experimental import pallas as pl
from jax.experimental.pallas import tpu as pltpu


def _round_up(x, m):
    return ((x + m - 1) // m) * m


def conv1d_bn_relu_kernel(x_ref, w_ref, shift_ref, o_ref, *, K, block_l):
    # x_ref:     (L_in_pad, C_in)   one batch element, L padded (conv pad + tile pad)
    # w_ref:     (K, C_in, C_pad)   conv weights with BN scale pre-folded
    # shift_ref: (1, C_pad)         folded conv-bias + BN shift
    # o_ref:     (block_l, C_pad)   lane-dense output tile
    li = pl.program_id(1)
    base = pl.multiple_of(li * block_l, 8)

    acc = jnp.zeros(o_ref.shape, jnp.float32)
    for k in range(K):  # static unroll over the (small) kernel taps
        xk = x_ref[pl.ds(base + k, block_l), :]            # (block_l, C_in)
        acc = acc + jnp.dot(xk, w_ref[k],
                            preferred_element_type=jnp.float32)
    y = acc + shift_ref[...]
    o_ref[...] = jnp.maximum(y, 0.0).astype(o_ref.dtype)


def conv1d_bn_relu(x_ncl, weight, bias, gamma, beta, run_mean, run_var,
                   *, padding=1, eps=1e-5, is_bn=True):
    """Conv1d(stride=1) -> eval-mode BatchNorm1d -> ReLU.

    x_ncl: (N, C_in, L) float32 (PyTorch Conv1d layout). Returns (N, C_out, L_out).
    """
    N, C_in, L = x_ncl.shape
    C_out, _, K = weight.shape
    L_out = L + 2 * padding - K + 1

    # ---- fold BN (eval mode) into conv weight / bias (wrapper-side glue) ----
    if is_bn:
        scale = gamma / jnp.sqrt(run_var + eps)
        shift = beta - run_mean * scale
    else:
        scale = jnp.ones((C_out,), jnp.float32)
        shift = jnp.zeros((C_out,), jnp.float32)
    # weight (C_out, C_in, K) -> (K, C_in, C_out), scale output channels.
    w_fold = (jnp.transpose(weight, (2, 1, 0)) * scale[None, None, :]).astype(jnp.float32)
    shift_fold = (bias * scale + shift).astype(jnp.float32)

    # ---- lane-dense output channels; tile output length in sublane multiples ----
    C_pad = _round_up(C_out, 128)
    w_p = jnp.pad(w_fold, ((0, 0), (0, 0), (0, C_pad - C_out)))
    shift_p = jnp.pad(shift_fold.reshape(1, C_out), ((0, 0), (0, C_pad - C_out)))

    MAX_BLOCK_L = 512
    if L_out <= MAX_BLOCK_L:
        block_l = _round_up(L_out, 8)
        n_l = 1
    else:
        block_l = MAX_BLOCK_L
        n_l = pl.cdiv(L_out, block_l)
    L_out_pad = n_l * block_l
    L_in_need = L_out_pad + K - 1      # rows the kernel may touch per batch element

    # (N, C_in, L) -> (N, L, C_in), zero-pad L: conv padding in front, conv padding
    # plus L-tile round-up at the back.
    x_nlc = jnp.transpose(x_ncl, (0, 2, 1))
    x_p = jnp.pad(x_nlc, ((0, 0), (padding, L_in_need - L - padding), (0, 0))
                  ).astype(jnp.float32)

    out_p = pl.pallas_call(
        partial(conv1d_bn_relu_kernel, K=K, block_l=block_l),
        out_shape=jax.ShapeDtypeStruct((N, L_out_pad, C_pad), x_ncl.dtype),
        grid=(N, n_l),
        in_specs=[
            # Per-batch input block; constant across L tiles -> DMA'd once per batch.
            pl.BlockSpec((None, L_in_need, C_in), lambda n, l: (n, 0, 0)),
            pl.BlockSpec((K, C_in, C_pad), lambda n, l: (0, 0, 0)),
            pl.BlockSpec((1, C_pad), lambda n, l: (0, 0)),
        ],
        out_specs=pl.BlockSpec((None, block_l, C_pad), lambda n, l: (n, l, 0)),
        compiler_params=pltpu.CompilerParams(
            dimension_semantics=("parallel", "arbitrary")),
    )(x_p, w_p, shift_p)

    out = out_p[:, :L_out, :C_out]                       # drop pad rows / channels
    return jnp.transpose(out, (0, 2, 1))                 # (N, C_out, L_out)


def _reference(x_ncl, weight, bias, gamma, beta, run_mean, run_var,
               *, padding=1, eps=1e-5, is_bn=True):
    """Pure-JAX reference matching PyTorch Conv1d + eval-mode BatchNorm1d + ReLU."""
    N, C_in, L = x_ncl.shape
    C_out, _, K = weight.shape
    L_out = L + 2 * padding - K + 1
    xp = jnp.pad(x_ncl, ((0, 0), (0, 0), (padding, padding)))
    out = jnp.zeros((N, C_out, L_out), jnp.float32)
    for k in range(K):
        out = out + jnp.einsum('ncl,oc->nol', xp[:, :, k:k + L_out], weight[:, :, k])
    out = out + bias[None, :, None]
    if is_bn:
        out = (out - run_mean[None, :, None]) / jnp.sqrt(run_var[None, :, None] + eps)
        out = out * gamma[None, :, None] + beta[None, :, None]
    return jnp.maximum(out, 0.0)


if __name__ == "__main__":
    # Module config: Conv1dBnRelu(in_channels=4, out_channels=8, is_bn=True,
    #                             kernel_size=3, padding=1)
    N, C_in, C_out, L, K, PAD = 2, 4, 8, 16, 3, 1

    key = jax.random.PRNGKey(0)
    kx, kw, kb, kg, kbt, km, kv = jax.random.split(key, 7)

    x = jax.random.normal(kx, (N, C_in, L), dtype=jnp.float32)
    weight = 0.3 * jax.random.normal(kw, (C_out, C_in, K), dtype=jnp.float32)
    bias = 0.1 * jax.random.normal(kb, (C_out,), dtype=jnp.float32)
    # BatchNorm1d parameters / running stats (deterministic, eval mode).
    gamma = 1.0 + 0.1 * jax.random.normal(kg, (C_out,), dtype=jnp.float32)
    beta = 0.1 * jax.random.normal(kbt, (C_out,), dtype=jnp.float32)
    run_mean = 0.1 * jax.random.normal(km, (C_out,), dtype=jnp.float32)
    run_var = 1.0 + 0.1 * jax.random.uniform(kv, (C_out,), dtype=jnp.float32)

    out = conv1d_bn_relu(x, weight, bias, gamma, beta, run_mean, run_var,
                         padding=PAD, is_bn=True)
    out = jax.block_until_ready(out)

    ref = _reference(x, weight, bias, gamma, beta, run_mean, run_var,
                     padding=PAD, is_bn=True)
    assert out.shape == (N, C_out, L)
    assert jnp.allclose(out, ref, atol=1e-5, rtol=1e-5), "mismatch vs reference"

    print("KERNEL_OK")
</pallas_src>

<mosaic_0001>
module attributes {stable_mosaic.version = 11 : i64} {
  func.func @conv1d_bn_relu_kernel(%arg0: i32, %arg1: i32, %arg2: memref<1x18x4xf32, #tpu.memory_space<vmem>>, %arg3: memref<3x4x128xf32, #tpu.memory_space<vmem>>, %arg4: memref<1x128xf32, #tpu.memory_space<vmem>>, %arg5: memref<1x16x128xf32, #tpu.memory_space<vmem>>) attributes {dimension_semantics = [#tpu.dimension_semantics<parallel>, #tpu.dimension_semantics<arbitrary>], iteration_bounds = array<i64: 2, 1>, scalar_prefetch = 0 : i64, scratch_operands = 0 : i64, tpu.core_type = #tpu.core_type<tc>, window_params = [{transform_indices = @transform_0, window_bounds = array<i64: 1, 18, 4>}, {pipeline_mode = #tpu.pipeline_mode<synchronous>, transform_indices = @transform_1, window_bounds = array<i64: 3, 4, 128>}, {pipeline_mode = #tpu.pipeline_mode<synchronous>, transform_indices = @transform_2, window_bounds = array<i64: 1, 128>}, {transform_indices = @transform_3, window_bounds = array<i64: 1, 16, 128>}]} {
    %c16_i32 = arith.constant 16 : i32
    %0 = arith.muli %arg1, %c16_i32 : i32
    %1 = tpu.assume_multiple %0, 8 : i32
    %cst = arith.constant 0.000000e+00 : f32
    %2 = vector.broadcast %cst : f32 to vector<16x128xf32>
    %c0_i32 = arith.constant 0 : i32
    %3 = arith.addi %1, %c0_i32 : i32
    %c0 = arith.constant 0 : index
    %4 = arith.index_cast %3 : i32 to index
    %c0_0 = arith.constant 0 : index
    %5 = vector.load %arg2[%c0, %4, %c0_0] : memref<1x18x4xf32, #tpu.memory_space<vmem>>, vector<1x16x4xf32>
    %6 = vector.shape_cast %5 : vector<1x16x4xf32> to vector<16x4xf32>
    %c0_1 = arith.constant 0 : index
    %c0_2 = arith.constant 0 : index
    %c0_3 = arith.constant 0 : index
    %7 = vector.load %arg3[%c0_1, %c0_2, %c0_3] : memref<3x4x128xf32, #tpu.memory_space<vmem>>, vector<1x4x128xf32>
    %8 = vector.shape_cast %7 : vector<1x4x128xf32> to vector<4x128xf32>
    %cst_4 = arith.constant dense<0.000000e+00> : vector<16x128xf32>
    %9 = tpu.matmul %6, %8, %cst_4 {dimension_numbers = #tpu.dot_dimension_numbers<[1], [0], [0], [1], [0, 0, 1, 1], [], []>} : vector<16x4xf32>, vector<4x128xf32>, vector<16x128xf32> -> vector<16x128xf32>
    %10 = arith.addf %2, %9 : vector<16x128xf32>
    %c1_i32 = arith.constant 1 : i32
    %11 = arith.addi %1, %c1_i32 : i32
    %c0_5 = arith.constant 0 : index
    %12 = arith.index_cast %11 : i32 to index
    %c0_6 = arith.constant 0 : index
    %13 = vector.load %arg2[%c0_5, %12, %c0_6] : memref<1x18x4xf32, #tpu.memory_space<vmem>>, vector<1x16x4xf32>
    %14 = vector.shape_cast %13 : vector<1x16x4xf32> to vector<16x4xf32>
    %c1 = arith.constant 1 : index
    %c0_7 = arith.constant 0 : index
    %c0_8 = arith.constant 0 : index
    %15 = vector.load %arg3[%c1, %c0_7, %c0_8] : memref<3x4x128xf32, #tpu.memory_space<vmem>>, vector<1x4x128xf32>
    %16 = vector.shape_cast %15 : vector<1x4x128xf32> to vector<4x128xf32>
    %cst_9 = arith.constant dense<0.000000e+00> : vector<16x128xf32>
    %17 = tpu.matmul %14, %16, %cst_9 {dimension_numbers = #tpu.dot_dimension_numbers<[1], [0], [0], [1], [0, 0, 1, 1], [], []>} : vector<16x4xf32>, vector<4x128xf32>, vector<16x128xf32> -> vector<16x128xf32>
    %18 = arith.addf %10, %17 : vector<16x128xf32>
    %c2_i32 = arith.constant 2 : i32
    %19 = arith.addi %1, %c2_i32 : i32
    %c0_10 = arith.constant 0 : index
    %20 = arith.index_cast %19 : i32 to index
    %c0_11 = arith.constant 0 : index
    %21 = vector.load %arg2[%c0_10, %20, %c0_11] : memref<1x18x4xf32, #tpu.memory_space<vmem>>, vector<1x16x4xf32>
    %22 = vector.shape_cast %21 : vector<1x16x4xf32> to vector<16x4xf32>
    %c2 = arith.constant 2 : index
    %c0_12 = arith.constant 0 : index
    %c0_13 = arith.constant 0 : index
    %23 = vector.load %arg3[%c2, %c0_12, %c0_13] : memref<3x4x128xf32, #tpu.memory_space<vmem>>, vector<1x4x128xf32>
    %24 = vector.shape_cast %23 : vector<1x4x128xf32> to vector<4x128xf32>
    %cst_14 = arith.constant dense<0.000000e+00> : vector<16x128xf32>
    %25 = tpu.matmul %22, %24, %cst_14 {dimension_numbers = #tpu.dot_dimension_numbers<[1], [0], [0], [1], [0, 0, 1, 1], [], []>} : vector<16x4xf32>, vector<4x128xf32>, vector<16x128xf32> -> vector<16x128xf32>
    %26 = arith.addf %18, %25 : vector<16x128xf32>
    %c0_15 = arith.constant 0 : index
    %c0_16 = arith.constant 0 : index
    %27 = vector.load %arg4[%c0_15, %c0_16] : memref<1x128xf32, #tpu.memory_space<vmem>>, vector<1x128xf32>
    %28 = vector.broadcast %27 : vector<1x128xf32> to vector<16x128xf32>
    %29 = arith.addf %26, %28 : vector<16x128xf32>
    %cst_17 = arith.constant 0.000000e+00 : f32
    %30 = vector.broadcast %cst_17 : f32 to vector<16x128xf32>
    %31 = arith.maximumf %29, %30 : vector<16x128xf32>
    %c0_18 = arith.constant 0 : index
    %c0_19 = arith.constant 0 : index
    %c0_20 = arith.constant 0 : index
    %32 = vector.load %arg5[%c0_18, %c0_19, %c0_20] : memref<1x16x128xf32, #tpu.memory_space<vmem>>, vector<1x16x128xf32>
    %33 = vector.shape_cast %32 : vector<1x16x128xf32> to vector<16x128xf32>
    %34 = vector.shape_cast %31 : vector<16x128xf32> to vector<1x16x128xf32>
    tpu.vector_store %arg5[%c0_18, %c0_19, %c0_20], %34 {strides = array<i32>} : memref<1x16x128xf32, #tpu.memory_space<vmem>>, vector<1x16x128xf32>,
    return
  }
  func.func @transform_0(%arg0: i32, %arg1: i32) -> (i32, i32, i32) {
    %c0_i32 = arith.constant 0 : i32
    %c0_i32_0 = arith.constant 0 : i32
    %c0_i32_1 = arith.constant 0 : i32
    return %arg0, %c0_i32, %c0_i32_0 : i32, i32, i32
  }
  func.func @transform_1(%arg0: i32, %arg1: i32) -> (i32, i32, i32) {
    %c0_i32 = arith.constant 0 : i32
    %c0_i32_0 = arith.constant 0 : i32
    %c0_i32_1 = arith.constant 0 : i32
    %c0_i32_2 = arith.constant 0 : i32
    return %c0_i32, %c0_i32_0, %c0_i32_1 : i32, i32, i32
  }
  func.func @transform_2(%arg0: i32, %arg1: i32) -> (i32, i32) {
    %c0_i32 = arith.constant 0 : i32
    %c0_i32_0 = arith.constant 0 : i32
    %c0_i32_1 = arith.constant 0 : i32
    return %c0_i32, %c0_i32_0 : i32, i32
  }
  func.func @transform_3(%arg0: i32, %arg1: i32) -> (i32, i32, i32) {
    %c0_i32 = arith.constant 0 : i32
    %c0_i32_0 = arith.constant 0 : i32
    return %arg0, %arg1, %c0_i32 : i32, i32, i32
  }
}

</mosaic_0001>

<bundles_post_ra>
// kernel: tpu_custom_call.1
= control target key start
LH: loop header
LB: loop body
LE: loop exit
PB: predicated region body
PF: predicated region fallthrough
CT: control target
= control target key end

     0   :  { %8 = vsyncpa [#allocation3], 0  ;;  %s709_s0 = inlined_call_operand.vmem [shape: f32[2,18,4], index: 0, kind: input, shape index: {}]   ;;  %s710_s1 = inlined_call_operand.vmem [shape: f32[3,4,128], index: 1, kind: input, shape index: {}]   ;;  %s711_s2 = inlined_call_operand.vmem [shape: f32[1,128], index: 2, kind: input, shape index: {}]   ;;  %s712_s3 = inlined_call_operand.hbm [shape: f32[2,16,128], index: 3, kind: output, shape index: {}]  }
   0x1   :  { %10 = vsyncpa [#allocation3 + $0x1], 0  ;;  %s600_s12 = smov 0   ;;  %s602_s13 = smov 0  }
   0x2   :  { %s604_s14 = smov 0   ;;  %s606_s15 = smov 0  }
   0x3   :  { %s608_s16 = smov 0   ;;  %s610_s17 = smov 0  }
   0x4 LB: > { %s410_s18 = sadd.s32 4294967295, %s576_s17   ;;  %s411_s19 = sadd.s32 4294967294, %s576_s17   ;;  %s576_s17 = sphi %s610_s17, %s16_s17   ;;  %s572_s16 = sphi %s608_s16, %s719_s16   ;;  %s568_s15 = sphi %s606_s15, %s718_s15   ;;  %s564_s14 = sphi %s604_s14, %s717_s14   ;;  %s560_s13 = sphi %s602_s13, %s716_s13   ;;  %s556_s12 = sphi %s600_s12, %s715_s12  }
   0x5   : > { %s28_s20 = sadd.s32 1, %s572_s16  ;;  %s105_s21 = sadd.s32 1, %s564_s14 }
   0x6   : > { %p30_p0 = scmp.ge.s32.totalorder %s28_s20, 2  ;;  %p115_p1 = scmp.ne.s32.totalorder %s564_s14, %s560_s13 }
   0x7   : > { %p116_p2 = scmp.eq.s32.totalorder %s410_s18, 1  ;;  %p121_p3 = scmp.ne.s32.totalorder %s560_s13, %s556_s12 }
   0x8   : > { %s721_s20 = smov (%p30_p0, %s28_s20), 0  ;;  %p122_p5 = scmp.eq.s32.totalorder %s411_s19, 1 }
   0x9   : > { %p640_p4 = por %p116_p2, %p115_p1  ;;  %s100_s23 = ssub.s32 %s572_s16, %s721_s20 }
   0xa   : > { %p414_p6 = scmp.ge.s32.totalorder %s576_s17, 1  ;;  %p103_p7 = scmp.eq.s32.totalorder %s100_s23, 0 }
   0xb   : > { %p647_p8 = por %p122_p5, %p121_p3  ;;  %p154_p9 = scmp.lt.s32.totalorder %s576_s17, 3 }
   0xc   : > { %s653_s25 = scalar_select %p103_p7, %s564_s14, %s105_s21  }
   0xd   : > { %p155_p10 = pnand %p414_p6, %p154_p9 }
   0xe   : > { %p178_p11 = scmp.lt.s32.totalorder (!%p155_p10), %s568_s15, 1  ;;  %s175_s10 = sand.u32 (!%p155_p10), 1, %s560_s13  }
   0xf   : > { %158 = sbr.rel (%p155_p10) target bundleno = 176 (0xb0), region = 32  ;;  %s415_s19 = sshll.u32 (!%p155_p10), %s175_s10, 4 }
  0x10   : > { %s437_s21 = sshll.u32 (!%p155_p10), %s568_s15, 4  ;;  %s177_s28 = scalar_lea.vmem (!%p155_p10), [#allocation2], %s415_s19 }
  0x11   : > { %s325_s27 = scalar_lea.hbm (!%p155_p10), %s712_s3, %s437_s21  ;;  %s326_s29 = sshll.u32 (!%p155_p10), %s177_s28, 4  ;;  %s327_s29 = int_to_ptr.vmem [resolvable:$true] %s326_s29 }
  0x12   : > { %s328_s30 = sshll.u32 (!%p155_p10), %s325_s27, 4  ;;  %s312_s4 = scalar_lea.sflag (!%p155_p10), [#allocation3], %s175_s10  ;;  %s329_s30 = int_to_ptr.hbm [resolvable:$true] %s328_s30 }
  0x13   : > { %s518_s8 = scalar_lea.hbm (!%p155_p10), %s712_s3, 32 }
  0x14   : > { %vm202_vm0 = vcmask 1043456   ;;  %v428_v0 = vld [vmem:[%s710_s1 + $0x8] sm:$0xf]  ;;  %v419_v1 = vld [vmem:[%s710_s1 + $0x4] sm:$0xf]  ;;  %s179_s5 = scalar_select %p178_p11, %s568_s15, 1 }
  0x15   : > { %429 = vmatpush.msk.msra.mxu2 %vm202_vm0, %v428_v0  ;;  %v188_v2 = vld [vmem:[%s710_s1] sm:$0xf]  ;;  %420 = vmatpush.msk.msra.mxu0 %vm202_vm0, %v419_v1  ;;  %vm195_vm1 = vcmask 31744   ;;  %s512_s15 = sshra.s32 %s329_s30, 4  ;;  %s513_s15 = int_to_ptr.hbm [resolvable:$true] %s512_s15 }
  0x16   : > { %423 = vmatpush.msk.msra.mxu1 %vm202_vm0, %v188_v2  ;;  %438 = vmatpush.msk.msra.mxu3 %vm202_vm0, %v419_v1  ;;  %s439_s6 = smul.u32 24, %s179_s5  ;;  %v497_v12 = vld [vmem:[%s711_s2] ss:$0 sm:$0xff]  ;;  %s514_s5 = scalar_lea.hbm %s513_s15, 16 }
  0x17   : > { %p515_p12 = scmp.ne.s32.totalorder %s513_s15, %s514_s5  ;;  %p519_p1 = scmp.lt.s32.totalorder %s513_s15, %s712_s3 }
  0x18   : > { %s182_s9 = scalar_lea.vmem %s709_s0, %s439_s6  ;;  %p520_p2 = scmp.lt.s32.totalorder %s518_s8, %s514_s5 }
  0x19   : > { %v426_v3 = vld [vmem:[%s182_s9 + $0x2] sm:$0xff]  ;;  %v427_v7 = vld [vmem:[%s182_s9 + $0xa] sm:$0xff]  ;;  %p516_p13 = pnand %p515_p12, %p640_p4 }
  0x1a   : > { %v417_v4 = vld [vmem:[%s182_s9 + $0x1] sm:$0xff]  ;;  %430 = vmatmul.msk.f32.vlgmr.msra.gmra.mxu2 %vm195_vm1, %v426_v3  ;;  %v418_v6 = vld [vmem:[%s182_s9 + $0x9] sm:$0xff]  ;;  %p521_p3 = por %p520_p2, %p519_p1 }
  0x1b   : > { %v186_v5 = vld [vmem:[%s182_s9] sm:$0xff]  ;;  %421 = vmatmul.msk.f32.vlgmr.msra.gmra.mxu0 %vm195_vm1, %v417_v4  ;;  %422 = vmatmul.msk.f32.vlgmr.msra.gmra.mxu3 %vm195_vm1, %v418_v6  ;;  %v187_v8 = vld [vmem:[%s182_s9 + $0x8] sm:$0xff]  ;;  %p517_p0 = pneg %p516_p13 }
  0x1c   : > { %424 = vmatmul.msk.f32.vlgmr.msra.gmra.mxu1 %vm195_vm1, %v186_v5 }
  0x1d   : > { %p522_p5 = pnand %p521_p3, %p517_p0 }
  0x22   : > { %431 = vmatmul.msk.f32.gmra.mxu2 %vm195_vm1, %v427_v7 }
  0x24   : > { %425 = vmatmul.msk.f32.gmra.mxu1 %vm195_vm1, %v187_v8 }
  0x98   : > { %v223_v9 = vpop.f32.mrf.mxu0 }
  0x99   : > { %v255_v10 = vpop.f32.mrf.mxu1 }
  0x9a   : > { %v256_v11 = vadd.f32 %v255_v10, %v223_v9 }
  0x9d   : > { %v293_v13 = vpop.f32.mrf.mxu2 }
  0x9e   : > { %v299_v14 = vadd.f32 %v293_v13, %v256_v11  ;;  %v226_v15 = vpop.f32.mrf.mxu3 }
  0xa0   : > { %v305_v16 = vadd.f32 %v497_v12, %v299_v14 }
  0xa1   : > { %v258_v17 = vpop.f32.mrf.mxu1 }
  0xa2   : > { %v307_v18 = vmax.f32 %v305_v16, 0.0  ;;  %v259_v19 = vadd.f32 %v258_v17, %v226_v15 }
  0xa4   : > { %309 = vst [vmem:[%s177_s28] sm:$0xff] %v307_v18 }
  0xa5   : > { %v296_v20 = vpop.f32.mrf.mxu2 }
  0xa6   : > { %v300_v21 = vadd.f32 %v296_v20, %v259_v19 }
  0xa8   : > { %v306_v22 = vadd.f32 %v497_v12, %v300_v21 }
  0xaa   : > { %v308_v23 = vmax.f32 %v306_v22, 0.0 }
  0xac   : > { %310 = vst [vmem:[%s177_s28 + $0x8] sm:$0xff] %v308_v23 }
  0xad   : > { %525 = shalt.err (!%p522_p5)
}
  0xae   : > { %s578_s10 = smov 128   ;;  %s579_s18 = smov 8  }
  0xaf   : > { %440 = dma.vmem_to_hbm [thread:$0]  (%p640_p4), %s327_s29, 256, %s329_s30, %s312_s4, %s578_s10, %s578_s10, %s579_s18  }
  0xb0 PF: > { %p446_p6 = scmp.ge.s32.totalorder %s576_s17, 2  ;;  %s343_s19 = sand.u32 1, %s556_s12  }
  0xb1   : > { %s344_s21 = scalar_lea.sflag [#allocation3], %s343_s19 }
  0xb2   : > { %p443_p7 = pnand %p446_p6, %p647_p8 }
  0xb4   : > { %p444_p9 = pneg %p443_p7 }
  0xb6   : > { %551 = dma.done.wait (%p444_p9), %s344_s21, 256  }
  0xb7   : > { %553 = vsyncadd (%p444_p9), %s344_s21, 4294967040  ;;  %s16_s17 = sadd.s32 1, %s576_s17   ;;  %s715_s12 = smov %s560_s13 }
  0xb8   : > { %p13_p10 = scmp.ge.s32.totalorder %s16_s17, 4   ;;  %s716_s13 = smov %s564_s14 }
  0xb9   : > { %s717_s14 = smov %s653_s25  ;;  %s718_s15 = smov %s572_s16 }
  0xba   : > { %s719_s16 = smov %s721_s20  ;;  %15 = sbr.rel (!%p13_p10) target bundleno = 4 (0x4), region = 72 }
  0xbf   :  { %350 = vsyncpa [#allocation3], 1 }
  0xc0   :  { %352 = vsyncpa [#allocation3 + $0x1], 1 }

</bundles_post_ra>
